<compile_context>
chip_gen: v7x
topology: tpu7x:2x2x1
jax: 0.10.0
libtpu: 0.0.40
codegen_flags: <defaults>
</compile_context>

<pallas_src>
import jax
import jax.numpy as jnp
from jax.experimental import pallas as pl
from jax.experimental.pallas import tpu as pltpu

LANE = 128


def _pose_encoder_kernel(m_ref, t_ref, o_ref):
    # m_ref: (16, TS, 128) -- matrix entry j (row-major) for each sample
    # t_ref: (4,  TS, 128) -- homogeneous translation per sample
    # o_ref: (3,  TS, 128) -- first 3 rows of inv(M) @ t per sample
    m00, m01, m02, m03 = m_ref[0], m_ref[1], m_ref[2], m_ref[3]
    m10, m11, m12, m13 = m_ref[4], m_ref[5], m_ref[6], m_ref[7]
    m20, m21, m22, m23 = m_ref[8], m_ref[9], m_ref[10], m_ref[11]
    m30, m31, m32, m33 = m_ref[12], m_ref[13], m_ref[14], m_ref[15]
    t0, t1, t2, t3 = t_ref[0], t_ref[1], t_ref[2], t_ref[3]

    # 2x2 minors of the top half (rows 0-1) and bottom half (rows 2-3).
    s0 = m00 * m11 - m10 * m01
    s1 = m00 * m12 - m10 * m02
    s2 = m00 * m13 - m10 * m03
    s3 = m01 * m12 - m11 * m02
    s4 = m01 * m13 - m11 * m03
    s5 = m02 * m13 - m12 * m03

    c5 = m22 * m33 - m32 * m23
    c4 = m21 * m33 - m31 * m23
    c3 = m21 * m32 - m31 * m22
    c2 = m20 * m33 - m30 * m23
    c1 = m20 * m32 - m30 * m22
    c0 = m20 * m31 - m30 * m21

    det = s0 * c5 - s1 * c4 + s2 * c3 + s3 * c2 - s4 * c1 + s5 * c0
    # EUP reciprocal + one Newton-Raphson refinement (keeps <= 1e-4 tolerance).
    inv_det = pl.reciprocal(det, approx=True)
    inv_det = inv_det * (2.0 - det * inv_det)

    # Only rows 0..2 of the adjugate are needed (row 3 of the output is unused).
    a00 = m11 * c5 - m12 * c4 + m13 * c3
    a01 = -m01 * c5 + m02 * c4 - m03 * c3
    a02 = m31 * s5 - m32 * s4 + m33 * s3
    a03 = -m21 * s5 + m22 * s4 - m23 * s3

    a10 = -m10 * c5 + m12 * c2 - m13 * c1
    a11 = m00 * c5 - m02 * c2 + m03 * c1
    a12 = -m30 * s5 + m32 * s2 - m33 * s1
    a13 = m20 * s5 - m22 * s2 + m23 * s1

    a20 = m10 * c4 - m11 * c2 + m13 * c0
    a21 = -m00 * c4 + m01 * c2 - m03 * c0
    a22 = m30 * s4 - m31 * s2 + m33 * s0
    a23 = -m20 * s4 + m21 * s2 - m23 * s0

    o_ref[0] = (a00 * t0 + a01 * t1 + a02 * t2 + a03 * t3) * inv_det
    o_ref[1] = (a10 * t0 + a11 * t1 + a12 * t2 + a13 * t3) * inv_det
    o_ref[2] = (a20 * t0 + a21 * t1 + a22 * t2 + a23 * t3) * inv_det


def pose_encoder_forward(trans, fwd_transformation, *, tile_sublanes=64):
    """trans: (B, 3), fwd_transformation: (B, K, 4, 4) -> (B, K*3)."""
    B, K = fwd_transformation.shape[0], fwd_transformation.shape[1]
    N = B * K
    dtype = jnp.float32

    # Homogeneous translation, repeated across K joints (glue in plain JAX).
    t_h = jnp.concatenate(
        [trans, jnp.ones((B, 1), dtype=trans.dtype)], axis=-1)          # (B, 4)
    t_rep = jnp.broadcast_to(t_h[:, None, :], (B, K, 4)).reshape(N, 4)  # (N, 4)
    mats = fwd_transformation.reshape(N, 16)                            # (N, 16)

    # Lane-dense tiling: pad N up to S * 128 with S a multiple of the sublane
    # tile TS (TS itself a multiple of 8).  Aim for >= 2 grid steps when the
    # problem is large enough so both v7x TensorCores get work.
    s_need = (N + LANE - 1) // LANE
    ts = min(int(tile_sublanes), 8 * ((s_need + 15) // 16))
    ts = max(8, (ts // 8) * 8)
    S = ((s_need + ts - 1) // ts) * ts
    n_pad = S * LANE

    # Padded rows get identity matrices (det = 1, keeps the inverse finite);
    # their outputs are sliced away below.
    mats = mats.astype(dtype)
    t_rep = t_rep.astype(dtype)
    n_extra = n_pad - N
    if n_extra:
        eye_rows = jnp.tile(jnp.eye(4, dtype=dtype).reshape(1, 16), (n_extra, 1))
        mats = jnp.concatenate([mats, eye_rows], axis=0)
        t_rep = jnp.concatenate(
            [t_rep, jnp.zeros((n_extra, 4), dtype=dtype)], axis=0)

    # Transpose so the batch axis is lane/sublane dense (wrapper-side layout
    # plumbing): (16, S, 128) and (4, S, 128).
    mats_t = mats.T.reshape(16, S, LANE)
    t_t = t_rep.T.reshape(4, S, LANE)

    out = pl.pallas_call(
        _pose_encoder_kernel,
        out_shape=jax.ShapeDtypeStruct((3, S, LANE), dtype),
        grid=(S // ts,),
        in_specs=[
            pl.BlockSpec((16, ts, LANE), lambda i: (0, i, 0)),
            pl.BlockSpec((4, ts, LANE), lambda i: (0, i, 0)),
        ],
        out_specs=pl.BlockSpec((3, ts, LANE), lambda i: (0, i, 0)),
        compiler_params=pltpu.CompilerParams(
            dimension_semantics=("parallel",)),
    )(mats_t, t_t)

    # (3, S, 128) -> (n_pad, 3) -> keep first N samples -> (B, K*3)
    proj = out.reshape(3, n_pad).T[:N]
    return proj.reshape(B, K * 3)
    # TODO(synk): if fwd_transformation is guaranteed SE(3) (bottom row
    # [0,0,0,1]), inv(M) @ t reduces to R^T (t_xyz - p) — ~30x fewer VALU ops.


def _reference_forward(trans, fwd_transformation):
    B, K = fwd_transformation.shape[0], fwd_transformation.shape[1]
    t_h = jnp.concatenate(
        [trans, jnp.ones((B, 1), dtype=trans.dtype)], axis=-1)
    t_rep = jnp.broadcast_to(t_h[:, None, :], (B, K, 4)).reshape(-1, 4, 1)
    inv = jnp.linalg.inv(fwd_transformation.reshape(-1, 4, 4))
    proj = jnp.matmul(inv, t_rep).reshape(B, K, 4)[:, :, :3]
    return proj.reshape(B, -1)


if __name__ == "__main__":
    # PoseEncoder has no learnable parameters; num_joints only fixes K.
    B, K = 2, 8  # num_joints = 8

    key = jax.random.PRNGKey(0)
    k_t, k_m = jax.random.split(key)
    trans = jax.random.normal(k_t, (B, 3), dtype=jnp.float32)
    # Well-conditioned invertible 4x4 transforms: identity + small perturbation.
    fwd = (jnp.eye(4, dtype=jnp.float32)[None, None]
           + 0.1 * jax.random.normal(k_m, (B, K, 4, 4), dtype=jnp.float32))

    out = pose_encoder_forward(trans, fwd)
    out = jax.block_until_ready(out)

    ref = _reference_forward(trans, fwd)
    assert out.shape == (B, K * 3), out.shape
    assert jnp.allclose(out, ref, rtol=1e-4, atol=1e-4), (
        float(jnp.max(jnp.abs(out - ref))))

    print("KERNEL_OK")
</pallas_src>

<mosaic_0001>
module attributes {stable_mosaic.version = 11 : i64} {
  func.func @_pose_encoder_kernel(%arg0: i32, %arg1: memref<16x8x128xf32, #tpu.memory_space<vmem>>, %arg2: memref<4x8x128xf32, #tpu.memory_space<vmem>>, %arg3: memref<3x8x128xf32, #tpu.memory_space<vmem>>) attributes {dimension_semantics = [#tpu.dimension_semantics<parallel>], iteration_bounds = array<i64: 1>, scalar_prefetch = 0 : i64, scratch_operands = 0 : i64, tpu.core_type = #tpu.core_type<tc>, window_params = [{transform_indices = @transform_0, window_bounds = array<i64: 16, 8, 128>}, {transform_indices = @transform_1, window_bounds = array<i64: 4, 8, 128>}, {transform_indices = @transform_2, window_bounds = array<i64: 3, 8, 128>}]} {
    %c0 = arith.constant 0 : index
    %c0_0 = arith.constant 0 : index
    %c0_1 = arith.constant 0 : index
    %0 = vector.load %arg1[%c0, %c0_0, %c0_1] : memref<16x8x128xf32, #tpu.memory_space<vmem>>, vector<1x8x128xf32>
    %1 = vector.shape_cast %0 : vector<1x8x128xf32> to vector<8x128xf32>
    %c1 = arith.constant 1 : index
    %c0_2 = arith.constant 0 : index
    %c0_3 = arith.constant 0 : index
    %2 = vector.load %arg1[%c1, %c0_2, %c0_3] : memref<16x8x128xf32, #tpu.memory_space<vmem>>, vector<1x8x128xf32>
    %3 = vector.shape_cast %2 : vector<1x8x128xf32> to vector<8x128xf32>
    %c2 = arith.constant 2 : index
    %c0_4 = arith.constant 0 : index
    %c0_5 = arith.constant 0 : index
    %4 = vector.load %arg1[%c2, %c0_4, %c0_5] : memref<16x8x128xf32, #tpu.memory_space<vmem>>, vector<1x8x128xf32>
    %5 = vector.shape_cast %4 : vector<1x8x128xf32> to vector<8x128xf32>
    %c3 = arith.constant 3 : index
    %c0_6 = arith.constant 0 : index
    %c0_7 = arith.constant 0 : index
    %6 = vector.load %arg1[%c3, %c0_6, %c0_7] : memref<16x8x128xf32, #tpu.memory_space<vmem>>, vector<1x8x128xf32>
    %7 = vector.shape_cast %6 : vector<1x8x128xf32> to vector<8x128xf32>
    %c4 = arith.constant 4 : index
    %c0_8 = arith.constant 0 : index
    %c0_9 = arith.constant 0 : index
    %8 = vector.load %arg1[%c4, %c0_8, %c0_9] : memref<16x8x128xf32, #tpu.memory_space<vmem>>, vector<1x8x128xf32>
    %9 = vector.shape_cast %8 : vector<1x8x128xf32> to vector<8x128xf32>
    %c5 = arith.constant 5 : index
    %c0_10 = arith.constant 0 : index
    %c0_11 = arith.constant 0 : index
    %10 = vector.load %arg1[%c5, %c0_10, %c0_11] : memref<16x8x128xf32, #tpu.memory_space<vmem>>, vector<1x8x128xf32>
    %11 = vector.shape_cast %10 : vector<1x8x128xf32> to vector<8x128xf32>
    %c6 = arith.constant 6 : index
    %c0_12 = arith.constant 0 : index
    %c0_13 = arith.constant 0 : index
    %12 = vector.load %arg1[%c6, %c0_12, %c0_13] : memref<16x8x128xf32, #tpu.memory_space<vmem>>, vector<1x8x128xf32>
    %13 = vector.shape_cast %12 : vector<1x8x128xf32> to vector<8x128xf32>
    %c7 = arith.constant 7 : index
    %c0_14 = arith.constant 0 : index
    %c0_15 = arith.constant 0 : index
    %14 = vector.load %arg1[%c7, %c0_14, %c0_15] : memref<16x8x128xf32, #tpu.memory_space<vmem>>, vector<1x8x128xf32>
    %15 = vector.shape_cast %14 : vector<1x8x128xf32> to vector<8x128xf32>
    %c8 = arith.constant 8 : index
    %c0_16 = arith.constant 0 : index
    %c0_17 = arith.constant 0 : index
    %16 = vector.load %arg1[%c8, %c0_16, %c0_17] : memref<16x8x128xf32, #tpu.memory_space<vmem>>, vector<1x8x128xf32>
    %17 = vector.shape_cast %16 : vector<1x8x128xf32> to vector<8x128xf32>
    %c9 = arith.constant 9 : index
    %c0_18 = arith.constant 0 : index
    %c0_19 = arith.constant 0 : index
    %18 = vector.load %arg1[%c9, %c0_18, %c0_19] : memref<16x8x128xf32, #tpu.memory_space<vmem>>, vector<1x8x128xf32>
    %19 = vector.shape_cast %18 : vector<1x8x128xf32> to vector<8x128xf32>
    %c10 = arith.constant 10 : index
    %c0_20 = arith.constant 0 : index
    %c0_21 = arith.constant 0 : index
    %20 = vector.load %arg1[%c10, %c0_20, %c0_21] : memref<16x8x128xf32, #tpu.memory_space<vmem>>, vector<1x8x128xf32>
    %21 = vector.shape_cast %20 : vector<1x8x128xf32> to vector<8x128xf32>
    %c11 = arith.constant 11 : index
    %c0_22 = arith.constant 0 : index
    %c0_23 = arith.constant 0 : index
    %22 = vector.load %arg1[%c11, %c0_22, %c0_23] : memref<16x8x128xf32, #tpu.memory_space<vmem>>, vector<1x8x128xf32>
    %23 = vector.shape_cast %22 : vector<1x8x128xf32> to vector<8x128xf32>
    %c12 = arith.constant 12 : index
    %c0_24 = arith.constant 0 : index
    %c0_25 = arith.constant 0 : index
    %24 = vector.load %arg1[%c12, %c0_24, %c0_25] : memref<16x8x128xf32, #tpu.memory_space<vmem>>, vector<1x8x128xf32>
    %25 = vector.shape_cast %24 : vector<1x8x128xf32> to vector<8x128xf32>
    %c13 = arith.constant 13 : index
    %c0_26 = arith.constant 0 : index
    %c0_27 = arith.constant 0 : index
    %26 = vector.load %arg1[%c13, %c0_26, %c0_27] : memref<16x8x128xf32, #tpu.memory_space<vmem>>, vector<1x8x128xf32>
    %27 = vector.shape_cast %26 : vector<1x8x128xf32> to vector<8x128xf32>
    %c14 = arith.constant 14 : index
    %c0_28 = arith.constant 0 : index
    %c0_29 = arith.constant 0 : index
    %28 = vector.load %arg1[%c14, %c0_28, %c0_29] : memref<16x8x128xf32, #tpu.memory_space<vmem>>, vector<1x8x128xf32>
    %29 = vector.shape_cast %28 : vector<1x8x128xf32> to vector<8x128xf32>
    %c15 = arith.constant 15 : index
    %c0_30 = arith.constant 0 : index
    %c0_31 = arith.constant 0 : index
    %30 = vector.load %arg1[%c15, %c0_30, %c0_31] : memref<16x8x128xf32, #tpu.memory_space<vmem>>, vector<1x8x128xf32>
    %31 = vector.shape_cast %30 : vector<1x8x128xf32> to vector<8x128xf32>
    %c0_32 = arith.constant 0 : index
    %c0_33 = arith.constant 0 : index
    %c0_34 = arith.constant 0 : index
    %32 = vector.load %arg2[%c0_32, %c0_33, %c0_34] : memref<4x8x128xf32, #tpu.memory_space<vmem>>, vector<1x8x128xf32>
    %33 = vector.shape_cast %32 : vector<1x8x128xf32> to vector<8x128xf32>
    %c1_35 = arith.constant 1 : index
    %c0_36 = arith.constant 0 : index
    %c0_37 = arith.constant 0 : index
    %34 = vector.load %arg2[%c1_35, %c0_36, %c0_37] : memref<4x8x128xf32, #tpu.memory_space<vmem>>, vector<1x8x128xf32>
    %35 = vector.shape_cast %34 : vector<1x8x128xf32> to vector<8x128xf32>
    %c2_38 = arith.constant 2 : index
    %c0_39 = arith.constant 0 : index
    %c0_40 = arith.constant 0 : index
    %36 = vector.load %arg2[%c2_38, %c0_39, %c0_40] : memref<4x8x128xf32, #tpu.memory_space<vmem>>, vector<1x8x128xf32>
    %37 = vector.shape_cast %36 : vector<1x8x128xf32> to vector<8x128xf32>
    %c3_41 = arith.constant 3 : index
    %c0_42 = arith.constant 0 : index
    %c0_43 = arith.constant 0 : index
    %38 = vector.load %arg2[%c3_41, %c0_42, %c0_43] : memref<4x8x128xf32, #tpu.memory_space<vmem>>, vector<1x8x128xf32>
    %39 = vector.shape_cast %38 : vector<1x8x128xf32> to vector<8x128xf32>
    %40 = arith.mulf %1, %11 : vector<8x128xf32>
    %41 = arith.mulf %9, %3 : vector<8x128xf32>
    %42 = arith.subf %40, %41 : vector<8x128xf32>
    %43 = arith.mulf %1, %13 : vector<8x128xf32>
    %44 = arith.mulf %9, %5 : vector<8x128xf32>
    %45 = arith.subf %43, %44 : vector<8x128xf32>
    %46 = arith.mulf %1, %15 : vector<8x128xf32>
    %47 = arith.mulf %9, %7 : vector<8x128xf32>
    %48 = arith.subf %46, %47 : vector<8x128xf32>
    %49 = arith.mulf %3, %13 : vector<8x128xf32>
    %50 = arith.mulf %11, %5 : vector<8x128xf32>
    %51 = arith.subf %49, %50 : vector<8x128xf32>
    %52 = arith.mulf %3, %15 : vector<8x128xf32>
    %53 = arith.mulf %11, %7 : vector<8x128xf32>
    %54 = arith.subf %52, %53 : vector<8x128xf32>
    %55 = arith.mulf %5, %15 : vector<8x128xf32>
    %56 = arith.mulf %13, %7 : vector<8x128xf32>
    %57 = arith.subf %55, %56 : vector<8x128xf32>
    %58 = arith.mulf %21, %31 : vector<8x128xf32>
    %59 = arith.mulf %29, %23 : vector<8x128xf32>
    %60 = arith.subf %58, %59 : vector<8x128xf32>
    %61 = arith.mulf %19, %31 : vector<8x128xf32>
    %62 = arith.mulf %27, %23 : vector<8x128xf32>
    %63 = arith.subf %61, %62 : vector<8x128xf32>
    %64 = arith.mulf %19, %29 : vector<8x128xf32>
    %65 = arith.mulf %27, %21 : vector<8x128xf32>
    %66 = arith.subf %64, %65 : vector<8x128xf32>
    %67 = arith.mulf %17, %31 : vector<8x128xf32>
    %68 = arith.mulf %25, %23 : vector<8x128xf32>
    %69 = arith.subf %67, %68 : vector<8x128xf32>
    %70 = arith.mulf %17, %29 : vector<8x128xf32>
    %71 = arith.mulf %25, %21 : vector<8x128xf32>
    %72 = arith.subf %70, %71 : vector<8x128xf32>
    %73 = arith.mulf %17, %27 : vector<8x128xf32>
    %74 = arith.mulf %25, %19 : vector<8x128xf32>
    %75 = arith.subf %73, %74 : vector<8x128xf32>
    %76 = arith.mulf %42, %60 : vector<8x128xf32>
    %77 = arith.mulf %45, %63 : vector<8x128xf32>
    %78 = arith.subf %76, %77 : vector<8x128xf32>
    %79 = arith.mulf %48, %66 : vector<8x128xf32>
    %80 = arith.addf %78, %79 : vector<8x128xf32>
    %81 = arith.mulf %51, %69 : vector<8x128xf32>
    %82 = arith.addf %80, %81 : vector<8x128xf32>
    %83 = arith.mulf %54, %72 : vector<8x128xf32>
    %84 = arith.subf %82, %83 : vector<8x128xf32>
    %85 = arith.mulf %57, %75 : vector<8x128xf32>
    %86 = arith.addf %84, %85 : vector<8x128xf32>
    %87 = tpu.reciprocal %86 {approx = true} : vector<8x128xf32> -> vector<8x128xf32>
    %88 = arith.mulf %86, %87 : vector<8x128xf32>
    %cst = arith.constant 2.000000e+00 : f32
    %89 = vector.broadcast %cst : f32 to vector<8x128xf32>
    %90 = arith.subf %89, %88 : vector<8x128xf32>
    %91 = arith.mulf %87, %90 : vector<8x128xf32>
    %92 = arith.mulf %11, %60 : vector<8x128xf32>
    %93 = arith.mulf %13, %63 : vector<8x128xf32>
    %94 = arith.subf %92, %93 : vector<8x128xf32>
    %95 = arith.mulf %15, %66 : vector<8x128xf32>
    %96 = arith.addf %94, %95 : vector<8x128xf32>
    %cst_44 = arith.constant 0.000000e+00 : f32
    %97 = vector.broadcast %cst_44 : f32 to vector<8x128xf32>
    %98 = arith.subf %97, %3 : vector<8x128xf32>
    %99 = arith.mulf %98, %60 : vector<8x128xf32>
    %100 = arith.mulf %5, %63 : vector<8x128xf32>
    %101 = arith.addf %99, %100 : vector<8x128xf32>
    %102 = arith.mulf %7, %66 : vector<8x128xf32>
    %103 = arith.subf %101, %102 : vector<8x128xf32>
    %104 = arith.mulf %27, %57 : vector<8x128xf32>
    %105 = arith.mulf %29, %54 : vector<8x128xf32>
    %106 = arith.subf %104, %105 : vector<8x128xf32>
    %107 = arith.mulf %31, %51 : vector<8x128xf32>
    %108 = arith.addf %106, %107 : vector<8x128xf32>
    %cst_45 = arith.constant 0.000000e+00 : f32
    %109 = vector.broadcast %cst_45 : f32 to vector<8x128xf32>
    %110 = arith.subf %109, %19 : vector<8x128xf32>
    %111 = arith.mulf %110, %57 : vector<8x128xf32>
    %112 = arith.mulf %21, %54 : vector<8x128xf32>
    %113 = arith.addf %111, %112 : vector<8x128xf32>
    %114 = arith.mulf %23, %51 : vector<8x128xf32>
    %115 = arith.subf %113, %114 : vector<8x128xf32>
    %cst_46 = arith.constant 0.000000e+00 : f32
    %116 = vector.broadcast %cst_46 : f32 to vector<8x128xf32>
    %117 = arith.subf %116, %9 : vector<8x128xf32>
    %118 = arith.mulf %117, %60 : vector<8x128xf32>
    %119 = arith.mulf %13, %69 : vector<8x128xf32>
    %120 = arith.addf %118, %119 : vector<8x128xf32>
    %121 = arith.mulf %15, %72 : vector<8x128xf32>
    %122 = arith.subf %120, %121 : vector<8x128xf32>
    %123 = arith.mulf %1, %60 : vector<8x128xf32>
    %124 = arith.mulf %5, %69 : vector<8x128xf32>
    %125 = arith.subf %123, %124 : vector<8x128xf32>
    %126 = arith.mulf %7, %72 : vector<8x128xf32>
    %127 = arith.addf %125, %126 : vector<8x128xf32>
    %cst_47 = arith.constant 0.000000e+00 : f32
    %128 = vector.broadcast %cst_47 : f32 to vector<8x128xf32>
    %129 = arith.subf %128, %25 : vector<8x128xf32>
    %130 = arith.mulf %129, %57 : vector<8x128xf32>
    %131 = arith.mulf %29, %48 : vector<8x128xf32>
    %132 = arith.addf %130, %131 : vector<8x128xf32>
    %133 = arith.mulf %31, %45 : vector<8x128xf32>
    %134 = arith.subf %132, %133 : vector<8x128xf32>
    %135 = arith.mulf %17, %57 : vector<8x128xf32>
    %136 = arith.mulf %21, %48 : vector<8x128xf32>
    %137 = arith.subf %135, %136 : vector<8x128xf32>
    %138 = arith.mulf %23, %45 : vector<8x128xf32>
    %139 = arith.addf %137, %138 : vector<8x128xf32>
    %140 = arith.mulf %9, %63 : vector<8x128xf32>
    %141 = arith.mulf %11, %69 : vector<8x128xf32>
    %142 = arith.subf %140, %141 : vector<8x128xf32>
    %143 = arith.mulf %15, %75 : vector<8x128xf32>
    %144 = arith.addf %142, %143 : vector<8x128xf32>
    %cst_48 = arith.constant 0.000000e+00 : f32
    %145 = vector.broadcast %cst_48 : f32 to vector<8x128xf32>
    %146 = arith.subf %145, %1 : vector<8x128xf32>
    %147 = arith.mulf %146, %63 : vector<8x128xf32>
    %148 = arith.mulf %3, %69 : vector<8x128xf32>
    %149 = arith.addf %147, %148 : vector<8x128xf32>
    %150 = arith.mulf %7, %75 : vector<8x128xf32>
    %151 = arith.subf %149, %150 : vector<8x128xf32>
    %152 = arith.mulf %25, %54 : vector<8x128xf32>
    %153 = arith.mulf %27, %48 : vector<8x128xf32>
    %154 = arith.subf %152, %153 : vector<8x128xf32>
    %155 = arith.mulf %31, %42 : vector<8x128xf32>
    %156 = arith.addf %154, %155 : vector<8x128xf32>
    %cst_49 = arith.constant 0.000000e+00 : f32
    %157 = vector.broadcast %cst_49 : f32 to vector<8x128xf32>
    %158 = arith.subf %157, %17 : vector<8x128xf32>
    %159 = arith.mulf %158, %54 : vector<8x128xf32>
    %160 = arith.mulf %19, %48 : vector<8x128xf32>
    %161 = arith.addf %159, %160 : vector<8x128xf32>
    %162 = arith.mulf %23, %42 : vector<8x128xf32>
    %163 = arith.subf %161, %162 : vector<8x128xf32>
    %164 = arith.mulf %96, %33 : vector<8x128xf32>
    %165 = arith.mulf %103, %35 : vector<8x128xf32>
    %166 = arith.addf %164, %165 : vector<8x128xf32>
    %167 = arith.mulf %108, %37 : vector<8x128xf32>
    %168 = arith.addf %166, %167 : vector<8x128xf32>
    %169 = arith.mulf %115, %39 : vector<8x128xf32>
    %170 = arith.addf %168, %169 : vector<8x128xf32>
    %171 = arith.mulf %170, %91 : vector<8x128xf32>
    %c0_50 = arith.constant 0 : index
    %c0_51 = arith.constant 0 : index
    %c0_52 = arith.constant 0 : index
    %172 = vector.load %arg3[%c0_50, %c0_51, %c0_52] : memref<3x8x128xf32, #tpu.memory_space<vmem>>, vector<1x8x128xf32>
    %173 = vector.shape_cast %172 : vector<1x8x128xf32> to vector<8x128xf32>
    %174 = vector.shape_cast %171 : vector<8x128xf32> to vector<1x8x128xf32>
    tpu.vector_store %arg3[%c0_50, %c0_51, %c0_52], %174 {strides = array<i32>} : memref<3x8x128xf32, #tpu.memory_space<vmem>>, vector<1x8x128xf32>,
    %175 = arith.mulf %122, %33 : vector<8x128xf32>
    %176 = arith.mulf %127, %35 : vector<8x128xf32>
    %177 = arith.addf %175, %176 : vector<8x128xf32>
    %178 = arith.mulf %134, %37 : vector<8x128xf32>
    %179 = arith.addf %177, %178 : vector<8x128xf32>
    %180 = arith.mulf %139, %39 : vector<8x128xf32>
    %181 = arith.addf %179, %180 : vector<8x128xf32>
    %182 = arith.mulf %181, %91 : vector<8x128xf32>
    %c1_53 = arith.constant 1 : index
    %c0_54 = arith.constant 0 : index
    %c0_55 = arith.constant 0 : index
    %183 = vector.load %arg3[%c1_53, %c0_54, %c0_55] : memref<3x8x128xf32, #tpu.memory_space<vmem>>, vector<1x8x128xf32>
    %184 = vector.shape_cast %183 : vector<1x8x128xf32> to vector<8x128xf32>
    %185 = vector.shape_cast %182 : vector<8x128xf32> to vector<1x8x128xf32>
    tpu.vector_store %arg3[%c1_53, %c0_54, %c0_55], %185 {strides = array<i32>} : memref<3x8x128xf32, #tpu.memory_space<vmem>>, vector<1x8x128xf32>,
    %186 = arith.mulf %144, %33 : vector<8x128xf32>
    %187 = arith.mulf %151, %35 : vector<8x128xf32>
    %188 = arith.addf %186, %187 : vector<8x128xf32>
    %189 = arith.mulf %156, %37 : vector<8x128xf32>
    %190 = arith.addf %188, %189 : vector<8x128xf32>
    %191 = arith.mulf %163, %39 : vector<8x128xf32>
    %192 = arith.addf %190, %191 : vector<8x128xf32>
    %193 = arith.mulf %192, %91 : vector<8x128xf32>
    %c2_56 = arith.constant 2 : index
    %c0_57 = arith.constant 0 : index
    %c0_58 = arith.constant 0 : index
    %194 = vector.load %arg3[%c2_56, %c0_57, %c0_58] : memref<3x8x128xf32, #tpu.memory_space<vmem>>, vector<1x8x128xf32>
    %195 = vector.shape_cast %194 : vector<1x8x128xf32> to vector<8x128xf32>
    %196 = vector.shape_cast %193 : vector<8x128xf32> to vector<1x8x128xf32>
    tpu.vector_store %arg3[%c2_56, %c0_57, %c0_58], %196 {strides = array<i32>} : memref<3x8x128xf32, #tpu.memory_space<vmem>>, vector<1x8x128xf32>,
    return
  }
  func.func @transform_0(%arg0: i32) -> (i32, i32, i32) {
    %c0_i32 = arith.constant 0 : i32
    %c0_i32_0 = arith.constant 0 : i32
    %c0_i32_1 = arith.constant 0 : i32
    return %c0_i32, %arg0, %c0_i32_0 : i32, i32, i32
  }
  func.func @transform_1(%arg0: i32) -> (i32, i32, i32) {
    %c0_i32 = arith.constant 0 : i32
    %c0_i32_0 = arith.constant 0 : i32
    %c0_i32_1 = arith.constant 0 : i32
    return %c0_i32, %arg0, %c0_i32_0 : i32, i32, i32
  }
  func.func @transform_2(%arg0: i32) -> (i32, i32, i32) {
    %c0_i32 = arith.constant 0 : i32
    %c0_i32_0 = arith.constant 0 : i32
    %c0_i32_1 = arith.constant 0 : i32
    return %c0_i32, %arg0, %c0_i32_0 : i32, i32, i32
  }
}

</mosaic_0001>

<bundles_post_ra>
// kernel: tpu_custom_call.1
= control target key start
LH: loop header
LB: loop body
LE: loop exit
PB: predicated region body
PF: predicated region fallthrough
CT: control target
= control target key end

     0   :  { %7 = vsyncpa [#allocation3], 0  ;;  %s560_s0 = inlined_call_operand.hbm [shape: f32[16,8,128], index: 0, kind: input, shape index: {}]   ;;  %s561_s1 = inlined_call_operand.hbm [shape: f32[4,8,128], index: 1, kind: input, shape index: {}]   ;;  %s562_s2 = inlined_call_operand.hbm [shape: f32[3,8,128], index: 2, kind: output, shape index: {}]  }
   0x1   :  { %8 = vsyncpa [#allocation6], 0 }
   0x2   :  { %9 = vsyncpa [#allocation4], 0  ;;  %s321_s9 = smov [#allocation2]   ;;  %s249_s13 = scalar_lea.hbm %s560_s0, 2048 }
   0x3   :  { %s15_s10 = sshll.u32 %s321_s9, 4  ;;  %p250_p0 = scmp.ne.s32.totalorder %s560_s0, %s249_s13  ;;  %s16_s10 = int_to_ptr.vmem [resolvable:$true] %s15_s10 }
   0x4   :  { %p253_p1 = scmp.lt.u32.totalorder %s249_s13, %s560_s0 }
   0x6   :  { %p255_p2 = pnand %p253_p1, %p250_p0 }
   0x8   :  { %258 = shalt.err (!%p255_p2)
}
   0x9   :  { %s259_s18 = scalar_lea.vmem %s16_s10, 2048  ;;  %p264_p4 = scmp.lt.s32.totalorder %s16_s10, %s16_s10 }
   0xa   :  { %p260_p3 = scmp.ne.s32.totalorder %s16_s10, %s259_s18  ;;  %p265_p5 = scmp.lt.s32.totalorder %s259_s18, %s259_s18 }
   0xc   :  { %p266_p6 = por %p265_p5, %p264_p4 }
   0xe   :  { %p267_p7 = pnand %p266_p6, %p260_p3 }
  0x10   :  { %270 = shalt.err (!%p267_p7)
}
  0x11   :  { %s322_s19 = smov 128   ;;  %s323_s20 = smov 8  }
  0x12   :  { %21 = dma.hbm_to_vmem [thread:$0]  %s560_s0, 2048, %s16_s10, [#allocation3], %s322_s19, %s322_s19, %s323_s20  }
  0x13   :  { %s324_s23 = smov [#allocation5]   ;;  %s271_s27 = scalar_lea.hbm %s561_s1, 512 }
  0x14   :  { %s27_s24 = sshll.u32 %s324_s23, 4  ;;  %p272_p8 = scmp.ne.s32.totalorder %s561_s1, %s271_s27  ;;  %s28_s24 = int_to_ptr.vmem [resolvable:$true] %s27_s24 }
  0x15   :  { %p275_p9 = scmp.lt.u32.totalorder %s271_s27, %s561_s1 }
  0x17   :  { %p277_p10 = pnand %p275_p9, %p272_p8 }
  0x19   :  { %280 = shalt.err (!%p277_p10)
}
  0x1a   :  { %s281_s4 = scalar_lea.vmem %s28_s24, 512  ;;  %p286_p12 = scmp.lt.s32.totalorder %s28_s24, %s28_s24 }
  0x1b   :  { %p282_p11 = scmp.ne.s32.totalorder %s28_s24, %s281_s4  ;;  %p287_p13 = scmp.lt.s32.totalorder %s281_s4, %s281_s4 }
  0x1d   :  { %p288_p0 = por %p287_p13, %p286_p12 }
  0x1f   :  { %p289_p1 = pnand %p288_p0, %p282_p11 }
  0x21   :  { %292 = shalt.err (!%p289_p1)
}
  0x22   :  { %33 = dma.hbm_to_vmem [thread:$0]  %s561_s1, 512, %s28_s24, [#allocation6], %s322_s19, %s322_s19, %s323_s20  }
  0x23   :  { %315 = dma.done.wait [#allocation3], 2048  }
  0x24   :  { %316 = vsyncadd [#allocation3], 4294965248 }
  0x25   :  { %317 = dma.done.wait [#allocation6], 512  }
  0x26   :  { %318 = vsyncadd [#allocation6], 4294966784  ;;  %v371_v0 = vld [vmem:[#allocation2] sm:$0xff]  ;;  %v373_v1 = vld [vmem:[#allocation2 + $0x8] sm:$0xff]  ;;  %s325_s1 = smov [#allocation7]  }
  0x27   :  { %v375_v2 = vld [vmem:[#allocation2 + $0x10] sm:$0xff]  ;;  %v377_v3 = vld [vmem:[#allocation2 + $0x18] sm:$0xff]  ;;  %v379_v4 = vld [vmem:[#allocation2 + $0x20] sm:$0xff]  ;;  %v134_v24 = vsub.f32 0.0, %v373_v1  ;;  %s229_s6 = sshll.u32 %s325_s1, 4  ;;  %s230_s6 = int_to_ptr.vmem [resolvable:$true] %s229_s6 }
  0x28   :  { %v381_v5 = vld [vmem:[#allocation2 + $0x28] sm:$0xff]  ;;  %v383_v6 = vld [vmem:[#allocation2 + $0x30] sm:$0xff]  ;;  %v385_v7 = vld [vmem:[#allocation2 + $0x38] sm:$0xff]  ;;  %v79_v9 = vmul.f32 %v379_v4, %v373_v1  ;;  %v82_v10 = vmul.f32 %v379_v4, %v375_v2  ;;  %v85_v11 = vmul.f32 %v379_v4, %v377_v3  ;;  %s293_s7 = scalar_lea.vmem %s230_s6, 384  ;;  %p298_p3 = scmp.lt.s32.totalorder %s230_s6, %s230_s6 }
  0x29   :  { %v78_v8 = vmul.f32 %v381_v5, %v371_v0  ;;  %v395_v12 = vld [vmem:[#allocation2 + $0x48] sm:$0xff]  ;;  %v397_v13 = vld [vmem:[#allocation2 + $0x50] sm:$0xff]  ;;  %v399_v14 = vld [vmem:[#allocation2 + $0x58] sm:$0xff]  ;;  %v81_v15 = vmul.f32 %v383_v6, %v371_v0  ;;  %v84_v16 = vmul.f32 %v385_v7, %v371_v0  ;;  %v87_v17 = vmul.f32 %v383_v6, %v373_v1  ;;  %p294_p2 = scmp.ne.s32.totalorder %s230_s6, %s293_s7  ;;  %p299_p4 = scmp.lt.s32.totalorder %s293_s7, %s293_s7 }
  0x2a   :  { %v88_v18 = vmul.f32 %v381_v5, %v375_v2  ;;  %v409_v19 = vld [vmem:[#allocation2 + $0x68] sm:$0xff]  ;;  %v411_v20 = vld [vmem:[#allocation2 + $0x70] sm:$0xff]  ;;  %v90_v22 = vmul.f32 %v385_v7, %v373_v1  ;;  %v91_v23 = vmul.f32 %v381_v5, %v377_v3  ;;  %v420_v25 = vld [vmem:[#allocation2 + $0x40] sm:$0xff]  ;;  %v93_v31 = vmul.f32 %v385_v7, %v375_v2 }
  0x2b   :  { %v413_v21 = vsub.f32 %v78_v8, %v79_v9  ;;  %v422_v26 = vld [vmem:[#allocation2 + $0x60] sm:$0xff]  ;;  %v424_v27 = vld [vmem:[#allocation2 + $0x78] sm:$0xff]  ;;  %v426_v28 = vsub.f32 %v81_v15, %v82_v10  ;;  %v428_v29 = vsub.f32 %v84_v16, %v85_v11  ;;  %v94_v32 = vmul.f32 %v383_v6, %v377_v3  ;;  %p300_p5 = por %p299_p4, %p298_p3 }
  0x2c   :  { %v89_v30 = vsub.f32 %v87_v17, %v88_v18  ;;  %v96_v33 = vmul.f32 %v424_v27, %v397_v13  ;;  %v97_v34 = vmul.f32 %v411_v20, %v399_v14  ;;  %v99_v35 = vmul.f32 %v424_v27, %v395_v12  ;;  %v477_v8 = vld [vmem:[#allocation5] sm:$0xff] }
  0x2d   :  { %v440_v36 = vsub.f32 %v90_v22, %v91_v23  ;;  %v100_v37 = vmul.f32 %v409_v19, %v399_v14  ;;  %v102_v38 = vmul.f32 %v411_v20, %v395_v12  ;;  %v103_v39 = vmul.f32 %v409_v19, %v397_v13  ;;  %v485_v23 = vld [vmem:[#allocation5 + $0x8] sm:$0xff]  ;;  %p301_p6 = pnand %p300_p5, %p294_p2 }
  0x2e   :  { %v98_v40 = vsub.f32 %v96_v33, %v97_v34  ;;  %v105_v41 = vmul.f32 %v424_v27, %v420_v25  ;;  %v106_v42 = vmul.f32 %v422_v26, %v399_v14  ;;  %v108_v43 = vmul.f32 %v411_v20, %v420_v25 }
  0x2f   :  { %v454_v44 = vsub.f32 %v99_v35, %v100_v37  ;;  %v104_v45 = vsub.f32 %v102_v38, %v103_v39  ;;  %v109_v46 = vmul.f32 %v422_v26, %v397_v13  ;;  %v111_v47 = vmul.f32 %v409_v19, %v420_v25 }
  0x30   :  { %v460_v48 = vsub.f32 %v105_v41, %v106_v42  ;;  %v112_v49 = vmul.f32 %v422_v26, %v395_v12  ;;  %v114_v50 = vmul.f32 %v98_v40, %v413_v21  ;;  %v129_v51 = vmul.f32 %v98_v40, %v381_v5 }
  0x31   :  { %v110_v52 = vsub.f32 %v108_v43, %v109_v46  ;;  %v115_v53 = vmul.f32 %v454_v44, %v426_v28  ;;  %v117_v54 = vmul.f32 %v104_v45, %v428_v29  ;;  %v130_v55 = vmul.f32 %v454_v44, %v383_v6 }
  0x32   :  { %v95_v56 = vsub.f32 %v93_v31, %v94_v32  ;;  %v471_v57 = vsub.f32 %v111_v47, %v112_v49  ;;  %v132_v58 = vmul.f32 %v104_v45, %v385_v7  ;;  %v135_v59 = vmul.f32 %v134_v24, %v98_v40 }
  0x33   :  { %v116_v60 = vsub.f32 %v114_v50, %v115_v53  ;;  %v119_v61 = vmul.f32 %v460_v48, %v89_v30  ;;  %v131_v62 = vsub.f32 %v129_v51, %v130_v55  ;;  %v136_v63 = vmul.f32 %v454_v44, %v375_v2 }
  0x34   :  { %v121_v9 = vmul.f32 %v110_v52, %v440_v36  ;;  %v138_v10 = vmul.f32 %v104_v45, %v377_v3  ;;  %v140_v11 = vmul.f32 %v95_v56, %v409_v19  ;;  %v141_v15 = vmul.f32 %v440_v36, %v411_v20  ;;  %v496_v45 = vld [vmem:[#allocation5 + $0x10] sm:$0xff] }
  0x35   :  { %v118_v16 = vadd.f32 %v117_v54, %v116_v60  ;;  %v133_v17 = vadd.f32 %v132_v58, %v131_v62  ;;  %v137_v18 = vadd.f32 %v136_v63, %v135_v59  ;;  %v143_v22 = vmul.f32 %v89_v30, %v424_v27 }
  0x36   :  { %v123_v24 = vmul.f32 %v471_v57, %v95_v56  ;;  %v142_v31 = vsub.f32 %v140_v11, %v141_v15  ;;  %v145_v32 = vsub.f32 0.0, %v395_v12  ;;  %v147_v33 = vmul.f32 %v440_v36, %v397_v13 }
  0x37   :  { %v120_v34 = vadd.f32 %v119_v61, %v118_v16  ;;  %v139_v35 = vsub.f32 %v137_v18, %v138_v10  ;;  %v195_v37 = vmul.f32 %v133_v17, %v477_v8  ;;  %v151_v38 = vsub.f32 0.0, %v379_v4 }
  0x38   :  { %v144_v39 = vadd.f32 %v143_v22, %v142_v31  ;;  %v146_v41 = vmul.f32 %v145_v32, %v95_v56  ;;  %v153_v42 = vmul.f32 %v460_v48, %v383_v6  ;;  %v155_v43 = vmul.f32 %v110_v52, %v385_v7 }
  0x39   :  { %v122_v46 = vsub.f32 %v120_v34, %v121_v9  ;;  %v196_v47 = vmul.f32 %v139_v35, %v485_v23  ;;  %v152_v49 = vmul.f32 %v151_v38, %v98_v40  ;;  %v157_v50 = vmul.f32 %v98_v40, %v371_v0 }
  0x3a   :  { %v148_v51 = vadd.f32 %v147_v33, %v146_v41  ;;  %v149_v53 = vmul.f32 %v89_v30, %v399_v14  ;;  %v158_v54 = vmul.f32 %v460_v48, %v375_v2  ;;  %v160_v55 = vmul.f32 %v110_v52, %v377_v3 }
  0x3b   :  { %v124_v58 = vadd.f32 %v123_v24, %v122_v46  ;;  %v154_v6 = vadd.f32 %v153_v42, %v152_v49  ;;  %v162_v59 = vsub.f32 0.0, %v422_v26  ;;  %v178_v60 = vsub.f32 0.0, %v371_v0 }
  0x3c   :  { %v197_v61 = vadd.f32 %v196_v47, %v195_v37  ;;  %v198_v62 = vmul.f32 %v144_v39, %v496_v45  ;;  %v159_v63 = vsub.f32 %v157_v50, %v158_v54  ;;  %v164_v40 = vmul.f32 %v428_v29, %v411_v20 }
  0x3d   :  { %247 = vrcp.f32 %v124_v58  ;;  %v156_v30 = vsub.f32 %v154_v6, %v155_v43  ;;  %v163_v9 = vmul.f32 %v162_v59, %v95_v56  ;;  %v166_v2 = vmul.f32 %v426_v28, %v424_v27 }
  0x3e   :  { %v150_v52 = vsub.f32 %v148_v51, %v149_v53  ;;  %v161_v10 = vadd.f32 %v160_v55, %v159_v63  ;;  %v168_v11 = vmul.f32 %v95_v56, %v420_v25  ;;  %v169_v0 = vmul.f32 %v428_v29, %v397_v13  ;;  %v77_v56 = vld [vmem:[#allocation5 + $0x18] sm:$0xff] }
  0x3f   :  { %v165_v15 = vadd.f32 %v164_v40, %v163_v9  ;;  %v171_v16 = vmul.f32 %v426_v28, %v399_v14  ;;  %v204_v17 = vmul.f32 %v156_v30, %v477_v8  ;;  %v173_v20 = vmul.f32 %v454_v44, %v379_v4 }
  0x40   :  { %v199_v18 = vadd.f32 %v198_v62, %v197_v61  ;;  %v170_v22 = vsub.f32 %v168_v11, %v169_v0  ;;  %v205_v24 = vmul.f32 %v161_v10, %v485_v23  ;;  %v174_v31 = vmul.f32 %v460_v48, %v381_v5 }
  0x41   :  { %v167_v32 = vsub.f32 %v165_v15, %v166_v2  ;;  %v176_v13 = vmul.f32 %v471_v57, %v385_v7  ;;  %v179_v33 = vmul.f32 %v178_v60, %v454_v44  ;;  %v180_v28 = vmul.f32 %v460_v48, %v373_v1 }
  0x42   :  { %v172_v34 = vadd.f32 %v171_v16, %v170_v22  ;;  %v206_v35 = vadd.f32 %v205_v24, %v204_v17  ;;  %v175_v4 = vsub.f32 %v173_v20, %v174_v31  ;;  %v182_v37 = vmul.f32 %v471_v57, %v377_v3 }
  0x43   :  { %v207_v38 = vmul.f32 %v167_v32, %v496_v45  ;;  %v181_v39 = vadd.f32 %v180_v28, %v179_v33  ;;  %v184_v5 = vmul.f32 %v440_v36, %v422_v26  ;;  %v185_v7 = vmul.f32 %v428_v29, %v409_v19 }
  0x44   :  { %v200_v41 = vmul.f32 %v150_v52, %v77_v56  ;;  %v177_v44 = vadd.f32 %v176_v13, %v175_v4  ;;  %v187_v1 = vmul.f32 %v413_v21, %v424_v27  ;;  %v189_v48 = vsub.f32 0.0, %v420_v25 }
  0x45   :  { %v209_v42 = vmul.f32 %v172_v34, %v77_v56  ;;  %v183_v43 = vsub.f32 %v181_v39, %v182_v37  ;;  %v186_v46 = vsub.f32 %v184_v5, %v185_v7  ;;  %v191_v3 = vmul.f32 %v428_v29, %v395_v12 }
  0x46   :  { %v208_v57 = vadd.f32 %v207_v38, %v206_v35  ;;  %v190_v47 = vmul.f32 %v189_v48, %v440_v36  ;;  %v193_v26 = vmul.f32 %v413_v21, %v399_v14  ;;  %v214_v19 = vmul.f32 %v177_v44, %v477_v8 }
  0x47   :  { %v248_v49 = vpop.eup %247  ;;  %v188_v50 = vadd.f32 %v187_v1, %v186_v46  ;;  %v215_v27 = vmul.f32 %v183_v43, %v485_v23  ;;  %v201_v6 = vadd.f32 %v200_v41, %v199_v18 }
  0x48   :  { %v126_v51 = vmul.f32 %v248_v49, %v124_v58  ;;  %v192_v25 = vadd.f32 %v191_v3, %v190_v47  ;;  %v210_v12 = vadd.f32 %v209_v42, %v208_v57 }
  0x49   :  { %v216_v53 = vadd.f32 %v215_v27, %v214_v19  ;;  %v217_v54 = vmul.f32 %v188_v50, %v496_v45 }
  0x4a   :  { %v127_v55 = vsub.f32 2.0, %v126_v51  ;;  %v194_v29 = vsub.f32 %v192_v25, %v193_v26 }
  0x4b   :  { %v218_v59 = vadd.f32 %v217_v54, %v216_v53 }
  0x4c   :  { %v128_v36 = vmul.f32 %v248_v49, %v127_v55  ;;  %v219_v60 = vmul.f32 %v194_v29, %v77_v56 }
  0x4e   :  { %v202_v14 = vmul.f32 %v201_v6, %v128_v36  ;;  %v211_v21 = vmul.f32 %v210_v12, %v128_v36  ;;  %v220_v8 = vadd.f32 %v219_v60, %v218_v59 }
  0x50   :  { %203 = vst [vmem:[#allocation7] sm:$0xff] %v202_v14  ;;  %213 = vst [vmem:[#allocation7 + $0x8] sm:$0xff] %v211_v21  ;;  %v221_v23 = vmul.f32 %v220_v8, %v128_v36 }
  0x52   :  { %223 = vst [vmem:[#allocation7 + $0x10] sm:$0xff] %v221_v23 }
  0x53   :  { %304 = shalt.err (!%p301_p6)
}
  0x54   :  { %s305_s10 = scalar_lea.hbm %s562_s2, 384 }
  0x55   :  { %p306_p7 = scmp.ne.s32.totalorder %s562_s2, %s305_s10  ;;  %p309_p8 = scmp.lt.u32.totalorder %s305_s10, %s562_s2 }
  0x57   :  { %p311_p9 = pnand %p309_p8, %p306_p7 }
  0x59   :  { %314 = shalt.err (!%p311_p9)
}
  0x5a   :  { %235 = dma.vmem_to_hbm [thread:$0]  %s230_s6, 384, %s562_s2, [#allocation4], %s322_s19, %s322_s19, %s323_s20  }
  0x5b   :  { %319 = dma.done.wait [#allocation4], 384  }
  0x5c   :  { %320 = vsyncadd [#allocation4], 4294966912 }
  0x5d   :  { %239 = vsyncpa [#allocation3], 1 }
  0x5e   :  { %240 = vsyncpa [#allocation6], 1 }
  0x5f   :  { %241 = vsyncpa [#allocation4], 1 }

</bundles_post_ra>
